<compile_context>
chip_gen: v7x
topology: tpu7x:2x2x1
jax: 0.10.0
libtpu: 0.0.40
codegen_flags: <defaults>
</compile_context>

<pallas_src>
import functools

import jax
import jax.numpy as jnp
from jax.experimental import pallas as pl
from jax.experimental.pallas import tpu as pltpu

_LANES = 128


def _multitask_elemwise_kernel(x_ref, out_ref):
    """x_ref: (3, Np) f32 tile; rows = [losses, params, is_regression].

    out = coeffs * losses + log(stds + 1), elementwise over (padded) tasks.
    """
    losses = x_ref[0:1, :]
    p = x_ref[1:2, :]
    is_reg = x_ref[2:3, :]
    stds = p * p
    denom = (is_reg + 1.0) * stds * stds
    coeffs = pl.reciprocal(denom, approx=False)           # EUP, keeps f32 accuracy
    weighted = coeffs * losses + jnp.log(stds + 1.0)
    out_ref[...] = weighted.astype(out_ref.dtype)


def _multitask_reduce_kernel(x_ref, out_ref, *, mean, n_tasks):
    """Same elementwise compute + masked in-kernel sum/mean; scalar result to SMEM."""
    losses = x_ref[0:1, :]
    p = x_ref[1:2, :]
    is_reg = x_ref[2:3, :]
    stds = p * p
    denom = (is_reg + 1.0) * stds * stds
    coeffs = pl.reciprocal(denom, approx=False)
    weighted = coeffs * losses + jnp.log(stds + 1.0)
    # Mask out padded lanes so they don't pollute the reduction.
    lane = jax.lax.broadcasted_iota(jnp.int32, weighted.shape, 1)
    weighted = jnp.where(lane < n_tasks, weighted, 0.0)
    total = jnp.sum(weighted)
    if mean:
        total = total / jnp.float32(n_tasks)
    out_ref[0, 0] = total


def multi_task_loss(losses, params, is_regression, reduction="none"):
    """JAX/Pallas equivalent of MultiTaskLoss.forward(losses, reduction).

    losses:        (n_tasks,) per-task losses
    params:        (n_tasks,) learnable uncertainty params (sigma-like)
    is_regression: (n_tasks,) 1.0 for regression tasks, 0.0 for classification
    reduction:     'none' | 'sum' | 'mean'
    """
    dtype = losses.dtype
    n_tasks = losses.shape[0]
    n_pad = max(_LANES, ((n_tasks + _LANES - 1) // _LANES) * _LANES)

    # Stack the three per-task vectors into a single padded f32 tile -> one input DMA.
    # Padded lanes: losses=0, params=1, is_reg=0 (finite everywhere; masked/sliced out later).
    losses_f = jnp.zeros((n_pad,), jnp.float32).at[:n_tasks].set(losses.astype(jnp.float32))
    params_f = jnp.ones((n_pad,), jnp.float32).at[:n_tasks].set(params.astype(jnp.float32))
    is_reg_f = jnp.zeros((n_pad,), jnp.float32).at[:n_tasks].set(
        is_regression.astype(jnp.float32))
    x = jnp.stack([losses_f, params_f, is_reg_f], axis=0)  # (3, n_pad) f32

    in_spec = pl.BlockSpec((3, n_pad), lambda: (0, 0))

    if reduction == "none":
        out = pl.pallas_call(
            _multitask_elemwise_kernel,
            out_shape=jax.ShapeDtypeStruct((1, n_pad), jnp.float32),
            grid=(),
            in_specs=[in_spec],
            out_specs=pl.BlockSpec((1, n_pad), lambda: (0, 0)),  # lane-dense store
        )(x)
        return out[0, :n_tasks].astype(dtype)

    if reduction in ("sum", "mean"):
        kernel = functools.partial(
            _multitask_reduce_kernel, mean=(reduction == "mean"), n_tasks=n_tasks
        )
        out = pl.pallas_call(
            kernel,
            out_shape=jax.ShapeDtypeStruct((1, 1), jnp.float32),
            grid=(),
            in_specs=[in_spec],
            out_specs=pl.BlockSpec(memory_space=pltpu.MemorySpace.SMEM),  # scalar -> SMEM
        )(x)
        return out[0, 0].astype(dtype)

    raise ValueError(f"unknown reduction: {reduction}")


def init_params(key, n_tasks):
    """torch.nn.init.trunc_normal_(mean=1.0, std=0.5, a=0, b=2.0) equivalent."""
    z = jax.random.truncated_normal(key, lower=-2.0, upper=2.0, shape=(n_tasks,))
    return (z * 0.5 + 1.0).astype(jnp.float32)


def _reference(losses, params, is_regression, reduction):
    losses = losses.astype(jnp.float32)
    params = params.astype(jnp.float32)
    is_regression = is_regression.astype(jnp.float32)
    stds = params ** 2
    coeffs = 1.0 / ((is_regression + 1.0) * stds ** 2)
    out = coeffs * losses + jnp.log(stds + 1.0)
    if reduction == "sum":
        return out.sum()
    if reduction == "mean":
        return out.mean()
    return out


if __name__ == "__main__":
    key = jax.random.PRNGKey(0)
    k_param, k_loss, k_reg = jax.random.split(key, 3)

    n_tasks = 8
    params = init_params(k_param, n_tasks)
    # synthetic per-task losses (non-negative)
    losses = jnp.abs(jax.random.normal(k_loss, (n_tasks,), dtype=jnp.float32)) * 2.0
    # half regression, half classification tasks
    is_regression = (jax.random.uniform(k_reg, (n_tasks,)) > 0.5).astype(jnp.float32)

    ok = True
    for reduction in ("none", "sum", "mean"):
        out = multi_task_loss(losses, params, is_regression, reduction)
        out = jax.block_until_ready(out)
        ref = _reference(losses, params, is_regression, reduction)
        if not jnp.allclose(out, ref, rtol=1e-5, atol=1e-5):
            ok = False

    if ok:
        print("KERNEL_OK")
    else:
        print("KERNEL_MISMATCH")
</pallas_src>

<mosaic_0001>
module attributes {stable_mosaic.version = 11 : i64} {
  func.func @_multitask_elemwise_kernel(%arg0: memref<3x128xf32, #tpu.memory_space<vmem>>, %arg1: memref<1x128xf32, #tpu.memory_space<vmem>>) attributes {dimension_semantics = [], scalar_prefetch = 0 : i64, scratch_operands = 0 : i64, tpu.core_type = #tpu.core_type<tc>} {
    %c0 = arith.constant 0 : index
    %c0_0 = arith.constant 0 : index
    %0 = vector.load %arg0[%c0, %c0_0] : memref<3x128xf32, #tpu.memory_space<vmem>>, vector<1x128xf32>
    %c1 = arith.constant 1 : index
    %c0_1 = arith.constant 0 : index
    %1 = vector.load %arg0[%c1, %c0_1] : memref<3x128xf32, #tpu.memory_space<vmem>>, vector<1x128xf32>
    %c2 = arith.constant 2 : index
    %c0_2 = arith.constant 0 : index
    %2 = vector.load %arg0[%c2, %c0_2] : memref<3x128xf32, #tpu.memory_space<vmem>>, vector<1x128xf32>
    %3 = arith.mulf %1, %1 : vector<1x128xf32>
    %cst = arith.constant 1.000000e+00 : f32
    %4 = vector.broadcast %cst : f32 to vector<1x128xf32>
    %5 = arith.addf %2, %4 : vector<1x128xf32>
    %6 = arith.mulf %5, %3 : vector<1x128xf32>
    %7 = arith.mulf %6, %3 : vector<1x128xf32>
    %8 = tpu.reciprocal %7 : vector<1x128xf32> -> vector<1x128xf32>
    %9 = arith.mulf %8, %0 : vector<1x128xf32>
    %cst_3 = arith.constant 1.000000e+00 : f32
    %10 = vector.broadcast %cst_3 : f32 to vector<1x128xf32>
    %11 = arith.addf %3, %10 : vector<1x128xf32>
    %12 = math.log %11 : vector<1x128xf32>
    %13 = arith.addf %9, %12 : vector<1x128xf32>
    %c0_4 = arith.constant 0 : index
    %c0_5 = arith.constant 0 : index
    %14 = vector.load %arg1[%c0_4, %c0_5] : memref<1x128xf32, #tpu.memory_space<vmem>>, vector<1x128xf32>
    tpu.vector_store %arg1[%c0_4, %c0_5], %13 {strides = array<i32>} : memref<1x128xf32, #tpu.memory_space<vmem>>, vector<1x128xf32>,
    return
  }
}

</mosaic_0001>

<bundles_post_ra>
// kernel: tpu_custom_call.1
= control target key start
LH: loop header
LB: loop body
LE: loop exit
PB: predicated region body
PF: predicated region fallthrough
CT: control target
= control target key end

     0   :  { %6 = vsyncpa [#allocation3], 0  ;;  %s140_s0 = inlined_call_operand.hbm [shape: f32[3,128], index: 0, kind: input, shape index: {}]   ;;  %s141_s1 = inlined_call_operand.hbm [shape: f32[1,128], index: 1, kind: output, shape index: {}]  }
   0x1   :  { %7 = vsyncpa [#allocation4], 0  ;;  %s104_s6 = smov [#allocation2]   ;;  %s56_s10 = scalar_lea.hbm %s140_s0, 64 }
   0x2   :  { %s14_s7 = sshll.u32 %s104_s6, 4  ;;  %p57_p0 = scmp.ne.s32.totalorder %s140_s0, %s56_s10  ;;  %s15_s7 = int_to_ptr.vmem [resolvable:$true] %s14_s7 }
   0x3   :  { %p60_p1 = scmp.lt.u32.totalorder %s56_s10, %s140_s0 }
   0x5   :  { %p62_p2 = pnand %p60_p1, %p57_p0 }
   0x7   :  { %65 = shalt.err (!%p62_p2)
}
   0x8   :  { %s66_s15 = scalar_lea.vmem %s15_s7, 64  ;;  %p71_p4 = scmp.lt.s32.totalorder %s15_s7, %s15_s7 }
   0x9   :  { %p67_p3 = scmp.ne.s32.totalorder %s15_s7, %s66_s15  ;;  %p72_p5 = scmp.lt.s32.totalorder %s66_s15, %s66_s15 }
   0xb   :  { %p73_p6 = por %p72_p5, %p71_p4 }
   0xd   :  { %p74_p7 = pnand %p73_p6, %p67_p3 }
   0xf   :  { %77 = shalt.err (!%p74_p7)
}
  0x10   :  { %17 = dma.hbm_to_vmem [thread:$0]  %s140_s0, 64, %s15_s7, [#allocation3]  }
  0x11   :  { %100 = dma.done.wait [#allocation3], 64  }
  0x12   :  { %101 = vsyncadd [#allocation3], 4294967232  ;;  %v22_v0 = vld [vmem:[#allocation2 + $0x1] sm:$0x1]  ;;  %v23_v1 = vld [vmem:[#allocation2 + $0x2] sm:$0x1] }
  0x13   :  { %v24_v2 = vmul.f32 %v22_v0, %v22_v0  ;;  %v25_v3 = vadd.f32 1.0, %v23_v1  ;;  %v21_v8 = vld [vmem:[#allocation2] sm:$0x1]  ;;  %s105_s18 = smov [#allocation5]  }
  0x14   :  { %s41_s19 = sshll.u32 %s105_s18, 4  ;;  %s42_s19 = int_to_ptr.vmem [resolvable:$true] %s41_s19 }
  0x15   :  { %v26_v4 = vmul.f32 %v25_v3, %v24_v2  ;;  %v30_v5 = vadd.f32 1.0, %v24_v2  ;;  %s78_s0 = scalar_lea.vmem %s42_s19, 16  ;;  %s82_s20 = scalar_lea.vmem %s42_s19, 32 }
  0x16   :  { %p79_p8 = scmp.ne.s32.totalorder %s42_s19, %s78_s0  ;;  %p83_p9 = scmp.lt.s32.totalorder %s42_s19, %s42_s19 }
  0x17   :  { %v27_v6 = vmul.f32 %v26_v4, %v24_v2  ;;  %52 = vlog2.f32 %v30_v5  ;;  %p84_p10 = scmp.lt.s32.totalorder %s82_s20, %s78_s0 }
  0x19   :  { %54 = vrcp.f32 %v27_v6  ;;  %p85_p11 = por %p84_p10, %p83_p9 }
  0x1b   :  { %p86_p12 = pnand %p85_p11, %p79_p8 }
  0x21   :  { %v53_v7 = vpop.eup %52 }
  0x22   :  { %v32_v9 = vmul.f32 0.6931472, %v53_v7 }
  0x23   :  { %v55_v10 = vpop.eup %54 }
  0x24   :  { %v29_v11 = vmul.f32 %v55_v10, %v21_v8 }
  0x26   :  { %v33_v12 = vadd.f32 %v32_v9, %v29_v11 }
  0x28   :  { %34 = vst [vmem:[#allocation5] sm:$0x1] %v33_v12 }
  0x29   :  { %89 = shalt.err (!%p86_p12)
}
  0x2a   :  { %s90_s23 = scalar_lea.hbm %s141_s1, 16 }
  0x2b   :  { %p91_p13 = scmp.ne.s32.totalorder %s141_s1, %s90_s23  ;;  %p94_p0 = scmp.lt.u32.totalorder %s90_s23, %s141_s1 }
  0x2d   :  { %p96_p1 = pnand %p94_p0, %p91_p13 }
  0x2f   :  { %99 = shalt.err (!%p96_p1)
}
  0x30   :  { %44 = dma.vmem_to_hbm [thread:$0]  %s42_s19, 16, %s141_s1, [#allocation4]  }
  0x31   :  { %102 = dma.done.wait [#allocation4], 16  }
  0x32   :  { %103 = vsyncadd [#allocation4], 4294967280 }
  0x33   :  { %48 = vsyncpa [#allocation3], 1 }
  0x34   :  { %49 = vsyncpa [#allocation4], 1 }

</bundles_post_ra>
